<compile_context>
chip_gen: v7x
topology: tpu7x:2x2x1
jax: 0.10.0
libtpu: 0.0.40
codegen_flags: <defaults>
</compile_context>

<pallas_src>
import jax
import jax.numpy as jnp
from jax.experimental import pallas as pl
from jax.experimental.pallas import tpu as pltpu


def _gated_merger_kernel(att_ref, x_ref, w_ref, b_ref, o_ref):
    # att_ref, x_ref, o_ref : (1, C, t_pix) VMEM tiles (pixels on lanes)
    # w_ref                 : (1, C, 1)     VMEM, full conv weight (f32)
    # b_ref                 : (1, 1)        SMEM scalar bias (f32)
    att = att_ref[...]                                          # native dtype
    x = x_ref[...]
    w = w_ref[...]                                              # (1, C, 1) f32
    # f32 accumulation for the channel reduce + sigmoid (matches reference).
    s = att.astype(jnp.float32) + x.astype(jnp.float32)         # (1, C, t)
    m = jnp.sum(s * w, axis=1, keepdims=True) + b_ref[0, 0]     # (1, 1, t)
    mask = jax.nn.sigmoid(m)
    # Keep the big tile in its native dtype; only downcast the tiny mask.
    o_ref[...] = att * mask.astype(att.dtype)


def _round_down_128(v):
    return (v // 128) * 128


def _vmem_capacity_bytes():
    """Best-effort device VMEM query; conservative (v7x, 64 MiB) fallback."""
    try:
        info = pltpu.get_tpu_info()
        cap = getattr(info, "vmem_capacity_bytes", None)
        if cap:
            return int(cap)
    except Exception:
        pass
    return 64 << 20


def _choose_pixel_tile(P, N, padded_c, itemsize, max_block_bytes):
    """Lane-dense pixel tile: a multiple of 128 (or the full extent when
    P <= 128), capped by (a) the padded per-array VMEM block budget,
    (b) the array extent, and (c) keeping >= ~8 total grid steps so both
    v7x TensorCores get work and the pipeline has depth."""
    if P <= 128:
        # Block dim equal to the full array dim is always legal.
        return P
    # (a) VMEM budget on the *sublane-padded* block footprint.
    cap_vmem = max(128, _round_down_128(max_block_bytes // (padded_c * itemsize)))
    # (b) never exceed the array extent (rounded down to a lane multiple);
    #     the trailing partial block is handled by the cdiv grid.
    cap_extent = max(128, _round_down_128(P))
    # (c) aim for N * steps >= 8 grid steps (only binds when work is small).
    steps_per_image = -(-8 // max(1, N))
    if steps_per_image > 1:
        cap_split = max(128, _round_down_128(P // steps_per_image))
    else:
        cap_split = cap_extent
    return max(128, min(cap_vmem, cap_extent, cap_split))


def gated_merger(att, x, weight, bias):
    """att, x: (N, C, H, W). weight: (C, 1) (torch conv weight (1,C,1,1)
    squeezed). bias: scalar. Returns (N, C, H, W) == GatedMerger.forward."""
    N, C, H, W = att.shape
    assert x.shape == att.shape
    P = H * W

    # Free, contiguous reshape: NCHW -> (N, C, H*W).
    att3 = att.reshape(N, C, P)
    x3 = x.reshape(N, C, P)

    itemsize = jnp.dtype(att.dtype).itemsize
    # Sublane pack: 8 for 4-byte, 16 for 2-byte, 32 for 1-byte dtypes.
    pack = max(1, 32 // itemsize)
    padded_c = -(-C // pack) * pack

    # Device-aware budgets: ~3 MiB blocks / <=36 MiB total on v7x (64 MiB VMEM
    # per TC); ~8 MiB blocks / <=56 MiB total on v5e/v6e (128 MiB VMEM).
    vmem_cap = _vmem_capacity_bytes()
    if vmem_cap <= (64 << 20):
        max_block_bytes = 3 << 20
        vmem_ceiling = 36 << 20
    else:
        max_block_bytes = 8 << 20
        vmem_ceiling = 56 << 20

    t_pix = _choose_pixel_tile(P, N, padded_c, itemsize, max_block_bytes)
    grid = (N, pl.cdiv(P, t_pix))

    # VMEM accounting on PADDED block bytes: 3 streamed arrays (att, x, out)
    # double-buffered, plus the resident weight block and slack.
    padded_block_bytes = padded_c * t_pix * itemsize
    w_block_bytes = padded_c * 128 * 4
    vmem_limit = int(min(
        vmem_ceiling,
        max(8 << 20, 6 * padded_block_bytes + 2 * w_block_bytes + (2 << 20))))

    w3 = jnp.asarray(weight, jnp.float32).reshape(1, C, 1)
    b2 = jnp.asarray(bias, jnp.float32).reshape(1, 1)

    cost = pl.CostEstimate(
        flops=5 * N * C * P,                       # add, mul, reduce, gate mul
        transcendentals=N * P,                     # one sigmoid per pixel
        bytes_accessed=3 * N * C * P * itemsize)   # 2 reads + 1 write

    out3 = pl.pallas_call(
        _gated_merger_kernel,
        out_shape=jax.ShapeDtypeStruct((N, C, P), att.dtype),
        grid=grid,
        in_specs=[
            pl.BlockSpec((1, C, t_pix), lambda n, p: (n, 0, p)),   # att tile
            pl.BlockSpec((1, C, t_pix), lambda n, p: (n, 0, p)),   # x tile
            pl.BlockSpec((1, C, 1), lambda n, p: (0, 0, 0)),       # conv weight
            pl.BlockSpec((1, 1), lambda n, p: (0, 0),
                         memory_space=pltpu.SMEM),                 # conv bias
        ],
        out_specs=pl.BlockSpec((1, C, t_pix), lambda n, p: (n, 0, p)),
        compiler_params=pltpu.CompilerParams(
            dimension_semantics=("parallel", "parallel"),
            vmem_limit_bytes=vmem_limit),
        cost_estimate=cost,
    )(att3, x3, w3, b2)

    return out3.reshape(N, C, H, W)


def _reference(att, x, weight, bias):
    # Pure-JAX reference of the PyTorch forward (NCHW).
    s = x + att
    m = jnp.einsum("nchw,c->nhw", s, weight[:, 0]) + bias
    mask = jax.nn.sigmoid(m)[:, None, :, :]        # (N, 1, H, W)
    return att * mask


def _run_case(key, N, C, H, W):
    k_att, k_x, k_w, k_b = jax.random.split(key, 4)
    att = jax.random.normal(k_att, (N, C, H, W), jnp.float32)
    x = jax.random.normal(k_x, (N, C, H, W), jnp.float32)
    # torch Conv2d(inplanes, 1, 1) weight has shape (1, C, 1, 1), bias (1,).
    weight = jax.random.normal(k_w, (C, 1), jnp.float32) * 0.1
    bias = jax.random.normal(k_b, (), jnp.float32) * 0.1

    out = jax.block_until_ready(gated_merger(att, x, weight, bias))
    ref = _reference(att, x, weight, bias)
    assert out.shape == (N, C, H, W)
    assert jnp.allclose(out, ref, atol=1e-5, rtol=1e-5), \
        f"mismatch vs reference for shape {(N, C, H, W)}"


if __name__ == "__main__":
    key = jax.random.PRNGKey(0)
    k0, k1 = jax.random.split(key, 2)

    # Main case: N=2, C=4, 16x16 image (P = 256, lane-aligned).
    _run_case(k0, 2, 4, 16, 16)

    # Ragged case: P = 320 is not a multiple of the 128-lane tile and C=3 is
    # not a multiple of the sublane pack -- exercises cdiv edge blocks and the
    # padded-VMEM budgeting.
    _run_case(k1, 1, 3, 16, 20)

    print("KERNEL_OK")
</pallas_src>

<mosaic_0001>
module attributes {stable_mosaic.version = 11 : i64} {
  func.func @_gated_merger_kernel(%arg0: i32, %arg1: i32, %arg2: memref<1x4x128xf32, #tpu.memory_space<vmem>>, %arg3: memref<1x4x128xf32, #tpu.memory_space<vmem>>, %arg4: memref<1x4x1xf32, #tpu.memory_space<vmem>>, %arg5: memref<1x1xf32, #tpu.memory_space<smem>>, %arg6: memref<1x4x128xf32, #tpu.memory_space<vmem>>) attributes {dimension_semantics = [#tpu.dimension_semantics<parallel>, #tpu.dimension_semantics<parallel>], iteration_bounds = array<i64: 2, 2>, scalar_prefetch = 0 : i64, scratch_operands = 0 : i64, tpu.core_type = #tpu.core_type<tc>, window_params = [{transform_indices = @transform_0, window_bounds = array<i64: 1, 4, 128>}, {transform_indices = @transform_1, window_bounds = array<i64: 1, 4, 128>}, {pipeline_mode = #tpu.pipeline_mode<synchronous>, transform_indices = @transform_2, window_bounds = array<i64: 1, 4, 1>}, {transform_indices = @transform_3, window_bounds = array<i64: 1, 1>}, {transform_indices = @transform_4, window_bounds = array<i64: 1, 4, 128>}]} {
    %c0 = arith.constant 0 : index
    %c0_0 = arith.constant 0 : index
    %c0_1 = arith.constant 0 : index
    %0 = vector.load %arg2[%c0, %c0_0, %c0_1] : memref<1x4x128xf32, #tpu.memory_space<vmem>>, vector<1x4x128xf32>
    %c0_2 = arith.constant 0 : index
    %c0_3 = arith.constant 0 : index
    %c0_4 = arith.constant 0 : index
    %1 = vector.load %arg3[%c0_2, %c0_3, %c0_4] : memref<1x4x128xf32, #tpu.memory_space<vmem>>, vector<1x4x128xf32>
    %c0_5 = arith.constant 0 : index
    %c0_6 = arith.constant 0 : index
    %c0_7 = arith.constant 0 : index
    %2 = vector.load %arg4[%c0_5, %c0_6, %c0_7] : memref<1x4x1xf32, #tpu.memory_space<vmem>>, vector<1x4x1xf32>
    %3 = arith.addf %0, %1 : vector<1x4x128xf32>
    %4 = vector.broadcast %2 : vector<1x4x1xf32> to vector<1x4x128xf32>
    %5 = arith.mulf %3, %4 : vector<1x4x128xf32>
    %cst = arith.constant dense<0.000000e+00> : vector<1x128xf32>
    %6 = vector.multi_reduction <add>, %5, %cst [1] : vector<1x4x128xf32> to vector<1x128xf32>
    %7 = vector.shape_cast %6 : vector<1x128xf32> to vector<1x1x128xf32>
    %c0_8 = arith.constant 0 : index
    %c0_9 = arith.constant 0 : index
    %8 = memref.load %arg5[%c0_8, %c0_9] : memref<1x1xf32, #tpu.memory_space<smem>>
    %9 = vector.broadcast %8 : f32 to vector<1x1x128xf32>
    %10 = arith.addf %7, %9 : vector<1x1x128xf32>
    %11 = arith.negf %10 : vector<1x1x128xf32>
    %12 = math.exp %11 : vector<1x1x128xf32>
    %cst_10 = arith.constant 1.000000e+00 : f32
    %13 = vector.broadcast %cst_10 : f32 to vector<1x1x128xf32>
    %14 = arith.addf %13, %12 : vector<1x1x128xf32>
    %15 = arith.divf %13, %14 : vector<1x1x128xf32>
    %16 = vector.broadcast %15 : vector<1x1x128xf32> to vector<1x4x128xf32>
    %17 = arith.mulf %0, %16 : vector<1x4x128xf32>
    %c0_11 = arith.constant 0 : index
    %c0_12 = arith.constant 0 : index
    %c0_13 = arith.constant 0 : index
    %18 = vector.load %arg6[%c0_11, %c0_12, %c0_13] : memref<1x4x128xf32, #tpu.memory_space<vmem>>, vector<1x4x128xf32>
    tpu.vector_store %arg6[%c0_11, %c0_12, %c0_13], %17 {strides = array<i32>} : memref<1x4x128xf32, #tpu.memory_space<vmem>>, vector<1x4x128xf32>,
    return
  }
  func.func @transform_0(%arg0: i32, %arg1: i32) -> (i32, i32, i32) {
    %c0_i32 = arith.constant 0 : i32
    %c0_i32_0 = arith.constant 0 : i32
    return %arg0, %c0_i32, %arg1 : i32, i32, i32
  }
  func.func @transform_1(%arg0: i32, %arg1: i32) -> (i32, i32, i32) {
    %c0_i32 = arith.constant 0 : i32
    %c0_i32_0 = arith.constant 0 : i32
    return %arg0, %c0_i32, %arg1 : i32, i32, i32
  }
  func.func @transform_2(%arg0: i32, %arg1: i32) -> (i32, i32, i32) {
    %c0_i32 = arith.constant 0 : i32
    %c0_i32_0 = arith.constant 0 : i32
    %c0_i32_1 = arith.constant 0 : i32
    %c0_i32_2 = arith.constant 0 : i32
    return %c0_i32, %c0_i32_0, %c0_i32_1 : i32, i32, i32
  }
  func.func @transform_3(%arg0: i32, %arg1: i32) -> (i32, i32) {
    %c0_i32 = arith.constant 0 : i32
    %c0_i32_0 = arith.constant 0 : i32
    %c0_i32_1 = arith.constant 0 : i32
    return %c0_i32, %c0_i32_0 : i32, i32
  }
  func.func @transform_4(%arg0: i32, %arg1: i32) -> (i32, i32, i32) {
    %c0_i32 = arith.constant 0 : i32
    %c0_i32_0 = arith.constant 0 : i32
    return %arg0, %c0_i32, %arg1 : i32, i32, i32
  }
}

</mosaic_0001>

<bundles_post_ra>
// kernel: tpu_custom_call.1
= control target key start
LH: loop header
LB: loop body
LE: loop exit
PB: predicated region body
PF: predicated region fallthrough
CT: control target
= control target key end

     0   :  { %s986_s0 = inlined_call_operand.hbm [shape: f32[2,4,256], index: 0, kind: input, shape index: {}]   ;;  %s987_s1 = inlined_call_operand.hbm [shape: f32[2,4,256], index: 1, kind: input, shape index: {}]   ;;  %s988_s2 = inlined_call_operand.vmem [shape: f32[1,4,1], index: 2, kind: input, shape index: {}]   ;;  %s989_s3 = inlined_call_operand.<no memory space> [shape: f32[1,1], index: 3, kind: input, shape index: {}]   ;;  %s990_s4 = inlined_call_operand.hbm [shape: f32[2,4,256], index: 4, kind: output, shape index: {}]  }
   0x1   :  { %995 = sst [smem:[#allocation12_spill]] %s986_s0 }
   0x2   :  { %9 = sst [smem:[#allocation2]] %s989_s3 }
   0x3   :  { %10 = vsyncpa [#allocation4], 0 }
   0x4   :  { %12 = vsyncpa [#allocation4 + $0x1], 0 }
   0x5   :  { %13 = vsyncpa [#allocation7], 0 }
   0x6   :  { %15 = vsyncpa [#allocation7 + $0x1], 0 }
   0x7   :  { %16 = vsyncpa [#allocation5], 0 }
   0x8   :  { %18 = vsyncpa [#allocation5 + $0x1], 0  ;;  %s733_s17 = smov 0   ;;  %s735_s18 = smov 0  }
   0x9   :  { %s737_s19 = smov 0   ;;  %s739_s20 = smov 0  }
   0xa   :  { %s741_s21 = smov 0   ;;  %s743_s22 = smov 0  }
   0xb   :  { %s745_s23 = smov 0   ;;  %s747_s3 = smov 0  }
   0xc LB: > { %s428_s24 = sadd.s32 4294967295, %s699_s3   ;;  %s429_s25 = sadd.s32 4294967294, %s699_s3   ;;  %s699_s3 = sphi %s747_s3, %s24_s3   ;;  %s695_s23 = sphi %s745_s23, %s1017_s23   ;;  %s691_s22 = sphi %s743_s22, %s1016_s22   ;;  %s687_s21 = sphi %s741_s21, %s1015_s21   ;;  %s683_s20 = sphi %s739_s20, %s1014_s20   ;;  %s679_s19 = sphi %s737_s19, %s1013_s19   ;;  %s675_s18 = sphi %s735_s18, %s1012_s18   ;;  %s671_s17 = sphi %s733_s17, %s1011_s17  }
   0xd   : > { %s33_s26 = sadd.s32 1, %s691_s22  ;;  %s36_s27 = sadd.s32 1, %s695_s23 }
   0xe   : > { %p34_p0 = scmp.ge.s32.totalorder %s33_s26, 2  ;;  %s45_s28 = sadd.s32 1, %s679_s19 }
   0xf   : > { %p52_p1 = scmp.ne.s32.totalorder %s679_s19, %s675_s18  ;;  %p53_p2 = scmp.eq.s32.totalorder %s699_s3, 0 }
  0x10   : > { %s1019_s26 = smov (%p34_p0, %s33_s26), 0  ;;  %s1021_s27 = smov (!%p34_p0, %s36_s27), %s695_s23 }
  0x11   : > { %s41_s29 = ssub.s32 %s691_s22, %s1019_s26  ;;  %p786_p3 = por %p53_p2, %p52_p1 }
  0x12   : > { %p38_p4 = scmp.ge.s32.totalorder %s1021_s27, 2  ;;  %p58_p5 = scmp.ne.s32.totalorder %s675_s18, %s671_s17 }
  0x13   : > { %p59_p6 = scmp.eq.s32.totalorder %s428_s24, 0  ;;  %p154_p7 = scmp.eq.s32.totalorder %s428_s24, 3 }
  0x14   : > { %s1023_s27 = smov (%p38_p4, %s1021_s27), 0  ;;  %p160_p10 = scmp.eq.s32.totalorder %s429_s25, 3 }
  0x15   : > { %p794_p8 = por %p59_p6, %p58_p5  ;;  %p798_p9 = por %p154_p7, %p52_p1 }
  0x16   : > { %s40_s7 = ssub.s32 %s695_s23, %s1023_s27  ;;  %p804_p12 = por %p160_p10, %p58_p5 }
  0x17   : > { %s997_s5 = scalar_select %p794_p8, 1, 0 }
  0x18   : > { %s998_s6 = scalar_select %p798_p9, 1, 0 }
  0x19   : > { %s42_s8 = sor.u32 %s41_s29, %s40_s7  ;;  %p465_p13 = scmp.lt.s32.totalorder %s699_s3, 4 }
  0x1a   : > { %p43_p11 = scmp.eq.s32.totalorder %s42_s8, 0  ;;  %s810_s10 = sand.u32 1, %s679_s19  }
  0x1b   : > { %s999_s9 = scalar_select %p804_p12, 1, 0 }
  0x1c   : > { %s813_s11 = scalar_select %p43_p11, %s679_s19, %s45_s28  }
  0x1d   : > { %s991_s12 = sshll.u32 %s810_s10, 2  ;;  %s433_s13 = sshll.u32 %s695_s23, 1 }
  0x1e   : > { %s818_s14 = sadd.s32 %s691_s22, %s433_s13  ;;  %s190_s15 = scalar_lea.vmem [#allocation3], %s991_s12 }
  0x1f   : > { %s199_s16 = sshll.u32 %s190_s15, 4  ;;  %s992_s24 = sshll.u32 %s818_s14, 6  ;;  %s823_s16 = int_to_ptr.vmem [resolvable:$true] %s199_s16 }
  0x20   : > { %s1000_s0 = sld [smem:[#allocation12_spill]]  ;;  %p834_p0 = pnand %p465_p13, %p786_p3 }
  0x21   : > { %s187_s8 = scalar_lea.sflag [#allocation4], %s810_s10 }
  0x22   : > { %p539_p5 = pneg %p834_p0 }
  0x26   : > { %s830_s7 = scalar_lea.hbm %s1000_s0, %s992_s24  ;;  %s542_s25 = scalar_lea.hbm %s1000_s0, 256 }
  0x27   : > { %s537_s13 = scalar_lea.hbm %s830_s7, 64  ;;  %p543_p3 = scmp.lt.u32.totalorder %s830_s7, %s1000_s0 }
  0x28   : > { %p538_p4 = scmp.ne.s32.totalorder %s830_s7, %s537_s13  ;;  %p544_p10 = scmp.lt.u32.totalorder %s542_s25, %s537_s13 }
  0x29   : > { %p546_p13 = scmp.lt.u32.totalorder %s537_s13, %s830_s7 }
  0x2a   : > { %p540_p6 = pnand %p539_p5, %p538_p4  ;;  %p545_p11 = por %p544_p10, %p543_p3 }
  0x2c   : > { %p541_p7 = pneg %p540_p6  ;;  %p547_p1 = por %p546_p13, %p545_p11 }
  0x2e   : > { %p548_p2 = pnand %p547_p1, %p541_p7 }
  0x30   : > { %551 = shalt.err (!%p548_p2)
}
  0x31   : > { %s552_s24 = scalar_lea.vmem %s823_s16, 64  ;;  %s701_s30 = smov [#allocation3]  }
  0x32   : > { %p553_p4 = scmp.ne.s32.totalorder %s823_s16, %s552_s24  ;;  %s557_s15 = sshll.u32 %s701_s30, 4  ;;  %s558_s15 = int_to_ptr.vmem [resolvable:$false] %s557_s15 }
  0x33   : > { %s559_s12 = scalar_lea.vmem %s558_s15, 128  ;;  %p560_p9 = scmp.lt.s32.totalorder %s823_s16, %s558_s15 }
  0x34   : > { %p555_p6 = pnand %p553_p4, %p539_p5  ;;  %p561_p3 = scmp.lt.s32.totalorder %s559_s12, %s552_s24 }
  0x36   : > { %p556_p12 = pneg %p555_p6  ;;  %p562_p10 = por %p561_p3, %p560_p9 }
  0x38   : > { %p563_p11 = pnand %p562_p10, %p556_p12 }
  0x3a   : > { %566 = shalt.err (!%p563_p11)
}
  0x3b   : > { %457 = dma.hbm_to_vmem [thread:$0]  (!%p834_p0), %s830_s7, 64, %s823_s16, %s187_s8  }
  0x3c   : > { %p1002_p1 = scmp.lt.s32.totalorder %s699_s3, 5  ;;  %p1003_p2 = scmp.ge.s32.totalorder %s699_s3, 1 }
  0x3d   : > { %s1005_s24 = sshll.u32 %s818_s14, 6  ;;  %s1006_s15 = sshll.u32 %s810_s10, 2 }
  0x3e   : > { %p870_p7 = pnand %p1003_p2, %p1002_p1  ;;  %s879_s30 = scalar_lea.hbm %s987_s1, %s1005_s24 }
  0x3f   : > { %s210_s12 = scalar_lea.vmem [#allocation6], %s1006_s15  ;;  %s207_s16 = scalar_lea.sflag [#allocation7], %s810_s10 }
  0x40   : > { %s1004_s13 = scalar_select %p870_p7, 1, 0 }
  0x41   : > { %s219_s0 = sshll.u32 %s210_s12, 4  ;;  %s567_s7 = scalar_lea.hbm %s879_s30, 64  ;;  %s220_s0 = int_to_ptr.vmem [resolvable:$true] %s219_s0 }
  0x42   : > { %p568_p9 = scmp.ne.s32.totalorder %s879_s30, %s567_s7  ;;  %s572_s24 = scalar_lea.hbm %s987_s1, 256 }
  0x43   : > { %p573_p4 = scmp.lt.u32.totalorder %s879_s30, %s987_s1  ;;  %p574_p6 = scmp.lt.u32.totalorder %s572_s24, %s567_s7 }
  0x44   : > { %p570_p12 = pnand %p568_p9, %p539_p5  ;;  %p576_p10 = scmp.lt.u32.totalorder %s567_s7, %s879_s30 }
  0x45   : > { %p575_p3 = por %p574_p6, %p573_p4 }
  0x46   : > { %p571_p13 = pneg %p570_p12 }
  0x47   : > { %p577_p11 = por %p576_p10, %p575_p3 }
  0x49   : > { %p578_p1 = pnand %p577_p11, %p571_p13 }
  0x4b   : > { %581 = shalt.err (!%p578_p1)
}
  0x4c   : > { %s582_s10 = scalar_lea.vmem %s220_s0, 64  ;;  %s702_s15 = smov [#allocation6]  }
  0x4d   : > { %p583_p2 = scmp.ne.s32.totalorder %s220_s0, %s582_s10  ;;  %s587_s12 = sshll.u32 %s702_s15, 4  ;;  %s588_s12 = int_to_ptr.vmem [resolvable:$false] %s587_s12 }
  0x4e   : > { %s589_s14 = scalar_lea.vmem %s588_s12, 128  ;;  %p590_p8 = scmp.lt.s32.totalorder %s220_s0, %s588_s12 }
  0x4f   : > { %p585_p9 = pnand %p583_p2, %p539_p5  ;;  %p591_p7 = scmp.lt.s32.totalorder %s589_s14, %s582_s10 }
  0x51   : > { %p586_p12 = pneg %p585_p9  ;;  %p592_p4 = por %p591_p7, %p590_p8 }
  0x53   : > { %p593_p6 = pnand %p592_p4, %p586_p12 }
  0x55   : > { %596 = shalt.err (!%p593_p6)
}
  0x56   : > { %460 = dma.hbm_to_vmem [thread:$0]  (!%p834_p0), %s879_s30, 64, %s220_s0, %s207_s16  }
  0x57   : > { %p1007_p13 = scmp.ne.s32.totalorder %s1004_s13, 0 }
  0x58   : > { %s906_s7 = sand.u32 (!%p1007_p13), 1, %s675_s18   ;;  %p1008_p8 = scmp.ne.s32.totalorder (!%p1007_p13), %s997_s5, 0 }
  0x59   : > { %228 = sbr.rel (%p1007_p13) target bundleno = 288 (0x120), region = 36  ;;  %s909_s8 = sshll.u32 (!%p1007_p13), %s906_s7, 2 }
  0x5a   : > { %s231_s24 = scalar_lea.sflag (!%p1007_p13), [#allocation4], %s906_s7  ;;  %s234_s25 = scalar_lea.vmem (!%p1007_p13), [#allocation3], %s909_s8 }
  0x60   : > { %658 = dma.done.wait (%p1008_p8), %s231_s24, 64  }
  0x61   : > { %660 = vsyncadd (%p1008_p8), %s231_s24, 4294967232  ;;  %s240_s0 = scalar_lea.sflag [#allocation7], %s906_s7  ;;  %s243_s28 = scalar_lea.vmem [#allocation6], %s909_s8 }
  0x62   : > { %662 = dma.done.wait (%p1008_p8), %s240_s0, 64  }
  0x63   : > { %664 = vsyncadd (%p1008_p8), %s240_s0, 4294967232  ;;  %v703_v0 = vmov 0   ;;  %v275_v1 = vld [vmem:[%s988_s2] sm:$0xf]  ;;  %v274_v3 = vld [vmem:[%s243_s28] sm:$0xf] }
  0x64   : > { %532 = vset.pattern.permute.xlu0 %v703_v0  ;;  %v273_v2 = vld [vmem:[%s234_s25] sm:$0xf]  ;;  %vm283_vm0 = vcmask 1043456   ;;  %s291_s16 = sld [smem:[#allocation2]]  ;;  %s444_s5 = sshll.u32 %s687_s21, 1 }
  0x65   : > { %279 = vperm.xlu0 %532, %v275_v1   ;;  %v276_v4 = vadd.f32 %v274_v3, %v273_v2  ;;  %s314_s29 = sadd.s32 %s683_s20, %s444_s5  ;;  %s272_s15 = scalar_lea.vmem [#allocation8], %s909_s8 }
  0x66   : > { %s445_s10 = sshll.u32 %s314_s29, 6  ;;  %s318_s12 = sshll.u32 %s272_s15, 4  ;;  %s934_s12 = int_to_ptr.vmem [resolvable:$true] %s318_s12 }
  0x67   : > { %s932_s25 = scalar_lea.hbm %s990_s4, %s445_s10  ;;  %s303_s0 = scalar_lea.sflag [#allocation5], %s906_s7 }
  0x68   : > { %s597_s28 = scalar_lea.vmem %s934_s12, 64  ;;  %p1009_p5 = scmp.ne.s32.totalorder %s998_s6, 0 }
  0x69   : > { %p598_p0 = scmp.ne.s32.totalorder %s934_s12, %s597_s28  ;;  %s704_s20 = smov [#allocation8]  }
  0x6a   : > { %v292_v13 = vstv %s291_s16  ;;  %s601_s21 = sshll.u32 %s704_s20, 4  ;;  %s602_s21 = int_to_ptr.vmem [resolvable:$false] %s601_s21 }
  0x6b   : > { %p599_p7 = pnand %p598_p0, %p1009_p5  ;;  %s603_s8 = scalar_lea.vmem %s602_s21, 128 }
  0x6c   : > { %p604_p10 = scmp.lt.s32.totalorder %s934_s12, %s602_s21  ;;  %p605_p11 = scmp.lt.s32.totalorder %s603_s8, %s597_s28 }
  0x6d   : > { %p600_p3 = pneg %p599_p7 }
  0x6e   : > { %p606_p1 = por %p605_p11, %p604_p10 }
  0x70   : > { %p607_p2 = pnand %p606_p1, %p600_p3 }
  0xe4   : > { %v280_v5 = vpop.permute.xlu0 %279 }
  0xe5   : > { %v282_v6 = vmul.f32 %v280_v5, %v276_v4 }
  0xe7   : > { %v284_v7 = vsel %vm283_vm0, %v282_v6, 0.0 }
  0xe8   : > { %v285_v8 = vrot.slane %v284_v7, 4 }
  0xea   : > { %v286_v9 = vadd.f32 %v285_v8, %v284_v7 }
  0xec   : > { %v287_v10 = vrot.slane %v286_v9, 2 }
  0xee   : > { %v288_v11 = vadd.f32 %v287_v10, %v286_v9 }
  0xf0   : > { %v289_v12 = vrot.slane %v288_v11, 1 }
  0xf2   : > { %v290_v14 = vadd.f32 %v289_v12, %v288_v11 }
  0xf4   : > { %v293_v15 = vadd.f32 %v292_v13, %v290_v14 }
  0xf6   : > { %v442_v16 = vmul.f32 -1.442695, %v293_v15 }
  0xf8   : > { %533 = vpow2.f32 %v442_v16 }
 0x102   : > { %v534_v17 = vpop.eup %533 }
 0x103   : > { %v297_v18 = vadd.f32 1.0, %v534_v17 }
 0x105   : > { %535 = vrcp.f32 %v297_v18 }
 0x10f   : > { %v536_v19 = vpop.eup %535 }
 0x110   : > { %v300_v20 = vmul.f32 %v536_v19, %v273_v2 }
 0x112   : > { %301 = vst [vmem:[%s272_s15] sm:$0xf] %v300_v20 }
 0x113   : > { %610 = shalt.err (!%p607_p2)
}
 0x114   : > { %s611_s7 = scalar_lea.hbm %s932_s25, 64  ;;  %s615_s16 = scalar_lea.hbm %s990_s4, 256 }
 0x115   : > { %p612_p9 = scmp.ne.s32.totalorder %s932_s25, %s611_s7  ;;  %p616_p6 = scmp.lt.u32.totalorder %s932_s25, %s990_s4 }
 0x116   : > { %p617_p13 = scmp.lt.u32.totalorder %s615_s16, %s611_s7  ;;  %p619_p0 = scmp.lt.u32.totalorder %s611_s7, %s932_s25 }
 0x117   : > { %p613_p12 = pnand %p612_p9, %p1009_p5 }
 0x118   : > { %p618_p8 = por %p617_p13, %p616_p6 }
 0x119   : > { %p614_p4 = pneg %p613_p12 }
 0x11a   : > { %p620_p7 = por %p619_p0, %p618_p8 }
 0x11c   : > { %p621_p3 = pnand %p620_p7, %p614_p4 }
 0x11e   : > { %624 = shalt.err (!%p621_p3)
}
 0x11f   : > { %452 = dma.vmem_to_hbm [thread:$0]  (%p1009_p5), %s934_s12, 64, %s932_s25, %s303_s0  }
 0x120 PF: > { %p466_p10 = scmp.ge.s32.totalorder %s699_s3, 2  ;;  %s330_s10 = sand.u32 1, %s671_s17  }
 0x121   : > { %p1010_p11 = scmp.ne.s32.totalorder %s999_s9, 0  ;;  %s331_s15 = scalar_lea.sflag [#allocation5], %s330_s10 }
 0x123   : > { %p462_p1 = pnand %p466_p10, %p1010_p11 }
 0x125   : > { %666 = dma.done.wait (!%p462_p1), %s331_s15, 64  }
 0x126   : > { %668 = vsyncadd (!%p462_p1), %s331_s15, 4294967232  ;;  %s24_s3 = sadd.s32 1, %s699_s3   ;;  %s1011_s17 = smov %s675_s18 }
 0x127   : > { %p21_p2 = scmp.ge.s32.totalorder %s24_s3, 6   ;;  %s1012_s18 = smov %s679_s19 }
 0x128   : > { %s1013_s19 = smov %s813_s11  ;;  %s1014_s20 = smov %s691_s22 }
 0x129   : > { %s1015_s21 = smov %s695_s23  ;;  %s1016_s22 = smov %s1019_s26 }
 0x12a   : > { %s1017_s23 = smov %s1023_s27  ;;  %23 = sbr.rel (!%p21_p2) target bundleno = 12 (0xc), region = 94 }
 0x131   :  { %336 = vsyncpa [#allocation4], 1 }
 0x132   :  { %338 = vsyncpa [#allocation4 + $0x1], 1 }
 0x133   :  { %339 = vsyncpa [#allocation7], 1 }
 0x134   :  { %341 = vsyncpa [#allocation7 + $0x1], 1 }
 0x135   :  { %342 = vsyncpa [#allocation5], 1 }
 0x136   :  { %344 = vsyncpa [#allocation5 + $0x1], 1 }

</bundles_post_ra>
